<compile_context>
chip_gen: v7x
topology: tpu7x:2x2x1
jax: 0.10.0
libtpu: 0.0.40
codegen_flags: <defaults>
</compile_context>

<pallas_src>
import functools

import jax
import jax.numpy as jnp
import numpy as np
from jax.experimental import pallas as pl
from jax.experimental.pallas import tpu as pltpu


# ---------------------------------------------------------------------------
# Helpers
# ---------------------------------------------------------------------------
def _circ_roll(x, shift, axis):
    """Static circular roll: y[..., i, ...] = x[..., (i - shift) % n, ...]."""
    n = x.shape[axis]
    shift = shift % n
    if shift == 0:
        return x
    tail = jax.lax.slice_in_dim(x, n - shift, n, axis=axis)
    head = jax.lax.slice_in_dim(x, 0, n - shift, axis=axis)
    return jnp.concatenate([tail, head], axis=axis)


def _circ_count(n, k):
    """(n, n) matrix C with (x @ C)[j] = sum_{a=0..k-1} x[(j - a) % n]."""
    c = np.zeros((n, n), np.float32)
    for j_out in range(n):
        for a in range(k):
            c[(j_out - a) % n, j_out] += 1.0
    return c


# ---------------------------------------------------------------------------
# Pallas kernel
# ---------------------------------------------------------------------------
def _chi2_kernel(beta_ref, z_ref, u_ref, m1_ref, m2_ref, s_ref, *,
                 kT, n_caps, eps):
    # z_ref / u_ref / s_ref blocks: (BK, C, D) with C = n_t*n_caps, D = d1*d2
    x = u_ref[...]
    bk, c, d = x.shape
    x2 = x * x                                        # u_caps ** 2

    # causal circular box-sum along the transform (time) axis.  Row index is
    # c = t*n_caps + cap, so a circular roll by s*n_caps along axis=1 maps
    # (t, cap) -> ((t - s) mod n_t, cap) exactly.
    t_acc = x2
    for s in range(1, kT):
        t_acc = t_acc + _circ_roll(x2, s * n_caps, axis=1)

    t_flat = t_acc.reshape(bk * c, d)

    # Spatial box-sums on the MXU (circulant matmuls).
    # v1: kH taps along d1, kW taps along d2
    # v2: kW taps along d1, kH taps along d2  (== transpose->conv->transpose)
    v1 = jnp.dot(t_flat, m1_ref[...], preferred_element_type=jnp.float32)
    v2 = jnp.dot(t_flat, m2_ref[...], preferred_element_type=jnp.float32)

    den = jnp.sqrt(v1 + eps) + jnp.sqrt(v2 + eps)
    z_flat = z_ref[...].reshape(bk * c, d)
    s_flat = (z_flat + beta_ref[0]) * pl.reciprocal(den, approx=False)
    s_ref[...] = s_flat.reshape(bk, c, d)


# ---------------------------------------------------------------------------
# Wrapper (only free reshapes in JAX; all real work in the Pallas kernel)
# ---------------------------------------------------------------------------
def chi2_capsules_forward(z, u, beta, *, n_caps, cap_dim1, cap_dim2, n_t,
                          kT, kH, kW, eps=1e-6):
    B = u.shape[0]
    d1, d2 = cap_dim1, cap_dim2
    C = n_t * n_caps
    D = d1 * d2
    orig_shape = z.shape

    z3 = z.astype(jnp.float32).reshape(B, C, D)       # free reshape
    u3 = u.astype(jnp.float32).reshape(B, C, D)       # free reshape

    # Precomputed 0/1 (multiplicity) circulant matrices for the spatial sums.
    m1 = jnp.asarray(np.kron(_circ_count(d1, kH), _circ_count(d2, kW)))
    m2 = jnp.asarray(np.kron(_circ_count(d1, kW), _circ_count(d2, kH)))

    # Batch-block size: target ~<=1 MiB per input block, but keep >=2 grid
    # steps when possible so the (parallel) grid axis can be split across
    # TensorCores on v7x.
    per_sample = C * D * 4
    bk = max(1, min(B, (1 << 20) // per_sample))
    if B >= 2:
        bk = min(bk, max(1, B // 2))
    while B % bk:
        bk -= 1
    grid = (B // bk,)

    kernel = functools.partial(_chi2_kernel, kT=kT, n_caps=n_caps, eps=eps)

    s3 = pl.pallas_call(
        kernel,
        out_shape=jax.ShapeDtypeStruct((B, C, D), jnp.float32),
        grid=grid,
        in_specs=[
            pl.BlockSpec(memory_space=pltpu.MemorySpace.SMEM),      # beta
            pl.BlockSpec((bk, C, D), lambda i: (i, 0, 0)),          # z
            pl.BlockSpec((bk, C, D), lambda i: (i, 0, 0)),          # u
            pl.BlockSpec((D, D), lambda i: (0, 0)),                 # M1 (resident)
            pl.BlockSpec((D, D), lambda i: (0, 0)),                 # M2 (resident)
        ],
        out_specs=pl.BlockSpec((bk, C, D), lambda i: (i, 0, 0)),
        compiler_params=pltpu.CompilerParams(
            dimension_semantics=("parallel",)),
    )(beta, z3, u3, m1, m2)

    return s3.reshape(orig_shape)


# ---------------------------------------------------------------------------
# Pure-JAX reference mirroring the PyTorch forward (for verification only)
# ---------------------------------------------------------------------------
def _ref_forward(z, u, beta, *, n_caps, cap_dim1, cap_dim2, n_t, kT, kH, kW,
                 eps=1e-6):
    B = u.shape[0]
    d1, d2 = cap_dim1, cap_dim2
    u_caps = u.reshape(B, n_t, n_caps, d1, d2)
    u_caps = jnp.transpose(u_caps, (0, 2, 1, 3, 4)).reshape(-1, 1, n_t, d1, d2)
    u_caps = u_caps ** 2.0

    def padder(x):  # F.pad(x, (KW-1,0, KH-1,0, KT-1,0), mode='circular')
        return jnp.pad(x, ((0, 0), (0, 0), (kT - 1, 0), (kH - 1, 0),
                           (kW - 1, 0)), mode="wrap")

    w = jnp.ones((1, 1, kT, kH, kW), jnp.float32)       # nn.init.ones_

    def conv3d(x):  # Conv3d(1,1,(kT,kH,kW), bias=False)
        return jax.lax.conv_general_dilated(
            x, w, window_strides=(1, 1, 1), padding="VALID",
            dimension_numbers=("NCDHW", "OIDHW", "NCDHW"))

    v1 = conv3d(padder(u_caps))
    u_caps_d2 = jnp.transpose(u_caps, (0, 1, 2, 4, 3))
    v2 = conv3d(padder(u_caps_d2))
    v2 = jnp.transpose(v2, (0, 1, 2, 4, 3))

    def back(v):
        v = v.reshape(-1, n_caps, n_t, d1, d2)
        v = jnp.transpose(v, (0, 2, 1, 3, 4))
        return v.reshape(z.shape)

    v1, v2 = back(v1), back(v2)
    return (z + beta) / (jnp.sqrt(v1 + eps) + jnp.sqrt(v2 + eps))


# ---------------------------------------------------------------------------
if __name__ == "__main__":
    # Small config consistent with the module's view/permute logic.
    B, n_t, n_caps, d1, d2 = 2, 8, 4, 8, 16
    kT, kH, kW = 3, 3, 5            # Conv3d kernel (asymmetric so v1 != v2)
    mu_init, eps = 1.0, 1e-6

    key = jax.random.PRNGKey(0)
    kz, ku = jax.random.split(key)
    # layout: NCHW, C = n_t * n_caps, H = cap_dim1, W = cap_dim2
    z = jax.random.normal(kz, (B, n_t * n_caps, d1, d2), dtype=jnp.float32)
    u = jax.random.normal(ku, (B, n_t * n_caps, d1, d2), dtype=jnp.float32)

    # deterministic parameter (correlated_mean_beta = ones(1) * mu_init)
    beta = jnp.ones((1,), jnp.float32) * mu_init

    cfg = dict(n_caps=n_caps, cap_dim1=d1, cap_dim2=d2, n_t=n_t,
               kT=kT, kH=kH, kW=kW, eps=eps)

    s = chi2_capsules_forward(z, u, beta, **cfg)
    s = jax.block_until_ready(s)

    s_ref = jax.block_until_ready(_ref_forward(z, u, beta, **cfg))
    np.testing.assert_allclose(np.asarray(s), np.asarray(s_ref),
                               rtol=1e-5, atol=1e-5)

    print("KERNEL_OK")
</pallas_src>

<mosaic_0001>
module attributes {stable_mosaic.version = 11 : i64} {
  func.func @_chi2_kernel(%arg0: i32, %arg1: memref<1xf32, #tpu.memory_space<smem>>, %arg2: memref<1x32x128xf32, #tpu.memory_space<vmem>>, %arg3: memref<1x32x128xf32, #tpu.memory_space<vmem>>, %arg4: memref<128x128xf32, #tpu.memory_space<vmem>>, %arg5: memref<128x128xf32, #tpu.memory_space<vmem>>, %arg6: memref<1x32x128xf32, #tpu.memory_space<vmem>>) attributes {dimension_semantics = [#tpu.dimension_semantics<parallel>], iteration_bounds = array<i64: 2>, scalar_prefetch = 0 : i64, scratch_operands = 0 : i64, tpu.core_type = #tpu.core_type<tc>, window_params = [{transform_indices = @transform_0, window_bounds = array<i64: 1>}, {transform_indices = @transform_1, window_bounds = array<i64: 1, 32, 128>}, {transform_indices = @transform_2, window_bounds = array<i64: 1, 32, 128>}, {pipeline_mode = #tpu.pipeline_mode<synchronous>, transform_indices = @transform_3, window_bounds = array<i64: 128, 128>}, {pipeline_mode = #tpu.pipeline_mode<synchronous>, transform_indices = @transform_4, window_bounds = array<i64: 128, 128>}, {transform_indices = @transform_5, window_bounds = array<i64: 1, 32, 128>}]} {
    %c0 = arith.constant 0 : index
    %c0_0 = arith.constant 0 : index
    %c0_1 = arith.constant 0 : index
    %0 = vector.load %arg3[%c0, %c0_0, %c0_1] : memref<1x32x128xf32, #tpu.memory_space<vmem>>, vector<1x32x128xf32>
    %1 = arith.mulf %0, %0 : vector<1x32x128xf32>
    %2 = vector.extract_strided_slice %1 {offsets = [0, 28, 0], sizes = [1, 4, 128], strides = [1, 1, 1]} : vector<1x32x128xf32> to vector<1x4x128xf32>
    %3 = vector.extract_strided_slice %1 {offsets = [0, 0, 0], sizes = [1, 28, 128], strides = [1, 1, 1]} : vector<1x32x128xf32> to vector<1x28x128xf32>
    %4 = tpu.concatenate %2, %3 in 1 : vector<1x4x128xf32>, vector<1x28x128xf32> -> vector<1x32x128xf32>
    %5 = arith.addf %1, %4 : vector<1x32x128xf32>
    %6 = vector.extract_strided_slice %1 {offsets = [0, 24, 0], sizes = [1, 8, 128], strides = [1, 1, 1]} : vector<1x32x128xf32> to vector<1x8x128xf32>
    %7 = vector.extract_strided_slice %1 {offsets = [0, 0, 0], sizes = [1, 24, 128], strides = [1, 1, 1]} : vector<1x32x128xf32> to vector<1x24x128xf32>
    %8 = tpu.concatenate %6, %7 in 1 : vector<1x8x128xf32>, vector<1x24x128xf32> -> vector<1x32x128xf32>
    %9 = arith.addf %5, %8 : vector<1x32x128xf32>
    %10 = vector.shape_cast %9 : vector<1x32x128xf32> to vector<32x128xf32>
    %c0_2 = arith.constant 0 : index
    %c0_3 = arith.constant 0 : index
    %11 = vector.load %arg4[%c0_2, %c0_3] : memref<128x128xf32, #tpu.memory_space<vmem>>, vector<128x128xf32>
    %cst = arith.constant dense<0.000000e+00> : vector<32x128xf32>
    %12 = tpu.matmul %10, %11, %cst {dimension_numbers = #tpu.dot_dimension_numbers<[1], [0], [0], [1], [0, 0, 1, 1], [], []>} : vector<32x128xf32>, vector<128x128xf32>, vector<32x128xf32> -> vector<32x128xf32>
    %c0_4 = arith.constant 0 : index
    %c0_5 = arith.constant 0 : index
    %13 = vector.load %arg5[%c0_4, %c0_5] : memref<128x128xf32, #tpu.memory_space<vmem>>, vector<128x128xf32>
    %cst_6 = arith.constant dense<0.000000e+00> : vector<32x128xf32>
    %14 = tpu.matmul %10, %13, %cst_6 {dimension_numbers = #tpu.dot_dimension_numbers<[1], [0], [0], [1], [0, 0, 1, 1], [], []>} : vector<32x128xf32>, vector<128x128xf32>, vector<32x128xf32> -> vector<32x128xf32>
    %cst_7 = arith.constant 9.99999997E-7 : f32
    %15 = vector.broadcast %cst_7 : f32 to vector<32x128xf32>
    %16 = arith.addf %12, %15 : vector<32x128xf32>
    %17 = math.sqrt %16 : vector<32x128xf32>
    %cst_8 = arith.constant 9.99999997E-7 : f32
    %18 = vector.broadcast %cst_8 : f32 to vector<32x128xf32>
    %19 = arith.addf %14, %18 : vector<32x128xf32>
    %20 = math.sqrt %19 : vector<32x128xf32>
    %21 = arith.addf %17, %20 : vector<32x128xf32>
    %c0_9 = arith.constant 0 : index
    %c0_10 = arith.constant 0 : index
    %c0_11 = arith.constant 0 : index
    %22 = vector.load %arg2[%c0_9, %c0_10, %c0_11] : memref<1x32x128xf32, #tpu.memory_space<vmem>>, vector<1x32x128xf32>
    %23 = vector.shape_cast %22 : vector<1x32x128xf32> to vector<32x128xf32>
    %c0_12 = arith.constant 0 : index
    %24 = memref.load %arg1[%c0_12] : memref<1xf32, #tpu.memory_space<smem>>
    %25 = vector.broadcast %24 : f32 to vector<32x128xf32>
    %26 = arith.addf %23, %25 : vector<32x128xf32>
    %27 = tpu.reciprocal %21 : vector<32x128xf32> -> vector<32x128xf32>
    %28 = arith.mulf %26, %27 : vector<32x128xf32>
    %29 = vector.shape_cast %28 : vector<32x128xf32> to vector<1x32x128xf32>
    %c0_13 = arith.constant 0 : index
    %c0_14 = arith.constant 0 : index
    %c0_15 = arith.constant 0 : index
    %30 = vector.load %arg6[%c0_13, %c0_14, %c0_15] : memref<1x32x128xf32, #tpu.memory_space<vmem>>, vector<1x32x128xf32>
    tpu.vector_store %arg6[%c0_13, %c0_14, %c0_15], %29 {strides = array<i32>} : memref<1x32x128xf32, #tpu.memory_space<vmem>>, vector<1x32x128xf32>,
    return
  }
  func.func @transform_0(%arg0: i32) -> i32 {
    %c0_i32 = arith.constant 0 : i32
    %c0_i32_0 = arith.constant 0 : i32
    return %c0_i32 : i32
  }
  func.func @transform_1(%arg0: i32) -> (i32, i32, i32) {
    %c0_i32 = arith.constant 0 : i32
    %c0_i32_0 = arith.constant 0 : i32
    %c0_i32_1 = arith.constant 0 : i32
    return %arg0, %c0_i32, %c0_i32_0 : i32, i32, i32
  }
  func.func @transform_2(%arg0: i32) -> (i32, i32, i32) {
    %c0_i32 = arith.constant 0 : i32
    %c0_i32_0 = arith.constant 0 : i32
    %c0_i32_1 = arith.constant 0 : i32
    return %arg0, %c0_i32, %c0_i32_0 : i32, i32, i32
  }
  func.func @transform_3(%arg0: i32) -> (i32, i32) {
    %c0_i32 = arith.constant 0 : i32
    %c0_i32_0 = arith.constant 0 : i32
    %c0_i32_1 = arith.constant 0 : i32
    return %c0_i32, %c0_i32_0 : i32, i32
  }
  func.func @transform_4(%arg0: i32) -> (i32, i32) {
    %c0_i32 = arith.constant 0 : i32
    %c0_i32_0 = arith.constant 0 : i32
    %c0_i32_1 = arith.constant 0 : i32
    return %c0_i32, %c0_i32_0 : i32, i32
  }
  func.func @transform_5(%arg0: i32) -> (i32, i32, i32) {
    %c0_i32 = arith.constant 0 : i32
    %c0_i32_0 = arith.constant 0 : i32
    %c0_i32_1 = arith.constant 0 : i32
    return %arg0, %c0_i32, %c0_i32_0 : i32, i32, i32
  }
}

</mosaic_0001>

<bundles_post_ra>
// kernel: tpu_custom_call.1
= control target key start
LH: loop header
LB: loop body
LE: loop exit
PB: predicated region body
PF: predicated region fallthrough
CT: control target
= control target key end

     0   :  { %s1639_s0 = inlined_call_operand.<no memory space> [shape: f32[1], index: 0, kind: input, shape index: {}]   ;;  %s1640_s1 = inlined_call_operand.hbm [shape: f32[2,32,128], index: 1, kind: input, shape index: {}]   ;;  %s1641_s2 = inlined_call_operand.hbm [shape: f32[2,32,128], index: 2, kind: input, shape index: {}]   ;;  %s1642_s3 = inlined_call_operand.hbm [shape: f32[128,128], index: 3, kind: input, shape index: {}]   ;;  %s1643_s4 = inlined_call_operand.hbm [shape: f32[128,128], index: 4, kind: input, shape index: {}]   ;;  %s1644_s5 = inlined_call_operand.hbm [shape: f32[2,32,128], index: 5, kind: output, shape index: {}]  }
   0x1   :  { %1652 = sst [smem:[#allocation17_spill]] %s1640_s1 }
   0x2   :  { %10 = sst [smem:[#allocation2]] %s1639_s0 }
   0x3   :  { %11 = vsyncpa [#allocation4], 0 }
   0x4   :  { %13 = vsyncpa [#allocation4 + $0x1], 0 }
   0x5   :  { %14 = vsyncpa [#allocation7], 0 }
   0x6   :  { %16 = vsyncpa [#allocation7 + $0x1], 0 }
   0x7   :  { %17 = vsyncpa [#allocation10], 0 }
   0x8   :  { %18 = vsyncpa [#allocation5], 0 }
   0x9   :  { %20 = vsyncpa [#allocation5 + $0x1], 0  ;;  %s1303_s20 = smov 0   ;;  %s1305_s21 = smov 0  }
   0xa   :  { %s1307_s22 = smov 0   ;;  %s1309_s23 = smov 0  }
   0xb LB: > { %s1324_s0 = sadd.s32 4294967295, %s1259_s23   ;;  %s760_s24 = sadd.s32 4294967294, %s1259_s23   ;;  %s1259_s23 = sphi %s1309_s23, %s1674_s23   ;;  %s1255_s22 = sphi %s1307_s22, %s1673_s22   ;;  %s1251_s21 = sphi %s1305_s21, %s1672_s21   ;;  %s1247_s20 = sphi %s1303_s20, %s1671_s20  }
   0xc   : > { %p67_p0 = scmp.ne.s32.totalorder %s1251_s21, %s1247_s20  ;;  %p1645_p1 = scmp.eq.s32.totalorder %s1324_s0, 0 }
   0xd   : > { %p165_p3 = scmp.eq.s32.totalorder %s760_s24, 1  ;;  %p761_p5 = scmp.ge.s32.totalorder %s1259_s23, 1 }
   0xe   : > { %p1333_p4 = por %p1645_p1, %p67_p0  ;;  %p172_p7 = scmp.lt.s32.totalorder %s1259_s23, 3 }
   0xf   : > { %p1338_p6 = por %p165_p3, %p67_p0  ;;  %s1261_s28 = smov [#allocation8]  }
  0x10   : > { %s1653_s25 = scalar_select %p1333_p4, 1, 0 }
  0x11   : > { %s1654_s26 = scalar_select %p1338_p6, 1, 0 }
  0x12   : > { %p1343_p8 = pnand %p761_p5, %p172_p7  ;;  %s187_s29 = sshll.u32 %s1261_s28, 4  ;;  %s1347_s29 = int_to_ptr.vmem [resolvable:$true] %s187_s29 }
  0x13   : > { %s1262_s6 = smov [#allocation9]   ;;  %s1065_s10 = scalar_lea.hbm %s1642_s3, 2048 }
  0x14   : > { %p979_p9 = pneg %p1343_p8  ;;  %s200_s7 = sshll.u32 %s1262_s6, 4  ;;  %s1358_s7 = int_to_ptr.vmem [resolvable:$true] %s200_s7 }
  0x15   : > { %p1066_p12 = scmp.ne.s32.totalorder %s1642_s3, %s1065_s10  ;;  %p1072_p5 = scmp.lt.u32.totalorder %s1065_s10, %s1642_s3 }
  0x16   : > { %p1354_p11 = pnand %p979_p9, %p1645_p1 }
  0x18   : > { %p1067_p13 = pneg %p1354_p11 }
  0x1a   : > { %p1068_p0 = pnand %p1067_p13, %p1066_p12 }
  0x1c   : > { %p1069_p3 = pneg %p1068_p0 }
  0x1e   : > { %p1074_p7 = pnand %p1072_p5, %p1069_p3 }
  0x20   : > { %1077 = shalt.err (!%p1074_p7)
}
  0x21   : > { %s1078_s15 = scalar_lea.vmem %s1347_s29, 2048  ;;  %p1086_p2 = scmp.lt.s32.totalorder %s1347_s29, %s1347_s29 }
  0x22   : > { %p1079_p9 = scmp.ne.s32.totalorder %s1347_s29, %s1078_s15  ;;  %p1087_p12 = scmp.lt.s32.totalorder %s1078_s15, %s1078_s15 }
  0x24   : > { %p1081_p10 = pnand %p1079_p9, %p1067_p13  ;;  %p1088_p0 = por %p1087_p12, %p1086_p2 }
  0x26   : > { %p1082_p1 = pneg %p1081_p10 }
  0x28   : > { %p1089_p6 = pnand %p1088_p0, %p1082_p1 }
  0x2a   : > { %1092 = shalt.err (!%p1089_p6)
}
  0x2b   : > { %s1646_s16 = smov 128   ;;  %s1648_s17 = smov 8  }
  0x2c   : > { %982 = dma.hbm_to_vmem [thread:$0]  (!%p1354_p11), %s1642_s3, 2048, %s1347_s29, [#allocation7], %s1646_s16, %s1646_s16, %s1648_s17  }
  0x2d   : > { %s1093_s6 = scalar_lea.hbm %s1643_s4, 2048 }
  0x2e   : > { %p1094_p1 = scmp.ne.s32.totalorder %s1643_s4, %s1093_s6  ;;  %p1100_p10 = scmp.lt.u32.totalorder %s1093_s6, %s1643_s4 }
  0x30   : > { %p1096_p2 = pnand %p1094_p1, %p1067_p13 }
  0x32   : > { %p1097_p6 = pneg %p1096_p2 }
  0x34   : > { %p1102_p3 = pnand %p1100_p10, %p1097_p6 }
  0x36   : > { %1105 = shalt.err (!%p1102_p3)
}
  0x37   : > { %s1106_s29 = scalar_lea.vmem %s1358_s7, 2048  ;;  %p1114_p12 = scmp.lt.s32.totalorder %s1358_s7, %s1358_s7 }
  0x38   : > { %p1107_p5 = scmp.ne.s32.totalorder %s1358_s7, %s1106_s29  ;;  %p1115_p0 = scmp.lt.s32.totalorder %s1106_s29, %s1106_s29 }
  0x3a   : > { %p1109_p7 = pnand %p1107_p5, %p1067_p13  ;;  %p1116_p1 = por %p1115_p0, %p1114_p12 }
  0x3c   : > { %p1110_p9 = pneg %p1109_p7 }
  0x3e   : > { %p1117_p2 = pnand %p1116_p1, %p1110_p9 }
  0x40   : > { %1120 = shalt.err (!%p1117_p2)
}
  0x41   : > { %985 = dma.hbm_to_vmem [thread:$0]  (!%p1354_p11), %s1643_s4, 2048, %s1358_s7, [#allocation10], %s1646_s16, %s1646_s16, %s1648_s17  }
  0x42   : > { %s1419_s30 = sadd.s32 1, %s1259_s23   ;;  %s54_s14 = sadd.s32 1, %s1255_s22 }
  0x43   : > { %s51_s15 = ssub.s32 %s1259_s23, %s1419_s30  ;;  %p61_p13 = scmp.ne.s32.totalorder %s1255_s22, %s1251_s21 }
  0x44   : > { %p52_p6 = scmp.eq.s32.totalorder %s51_s15, 0  ;;  %p62_p10 = scmp.eq.s32.totalorder %s1259_s23, 0 }
  0x45   : > { %p1657_p3 = scmp.eq.s32.totalorder %s1324_s0, 1  ;;  %p999_p7 = scmp.lt.s32.totalorder %s1259_s23, 2 }
  0x46   : > { %s1435_s19 = scalar_select %p52_p6, %s1255_s22, %s54_s14  }
  0x47   : > { %p1429_p5 = por %p1657_p3, %p61_p13  ;;  %p63_p9 = por %p62_p10, %p61_p13 }
  0x48   : > { %s214_s24 = sand.u32 1, %s1255_s22   ;;  %s782_s7 = sshll.u32 %s1259_s23, 9 }
  0x49   : > { %s1658_s18 = scalar_select %p1429_p5, 1, 0 }
  0x4a   : > { %s765_s28 = sshll.u32 %s214_s24, 5  ;;  %s1659_s1 = sld [smem:[#allocation17_spill]] }
  0x4b   : > { %s218_s10 = scalar_lea.vmem [#allocation3], %s765_s28  ;;  %p1446_p11 = pnand %p999_p7, %p63_p9 }
  0x4c   : > { %s225_s11 = sshll.u32 %s218_s10, 4  ;;  %s1453_s14 = scalar_lea.hbm %s1641_s2, %s782_s7  ;;  %s1444_s11 = int_to_ptr.vmem [resolvable:$true] %s225_s11 }
  0x4d   : > { %s239_s15 = scalar_lea.vmem [#allocation6], %s765_s28  ;;  %s1457_s8 = scalar_lea.sflag [#allocation4], %s214_s24 }
  0x4e   : > { %s1455_s6 = sshll.u32 %s239_s15, 4  ;;  %p1123_p0 = pneg %p1446_p11  ;;  %s1489_s6 = int_to_ptr.vmem [resolvable:$true] %s1455_s6 }
  0x50   : > { %s1442_s9 = scalar_lea.hbm %s1659_s1, %s782_s7  ;;  %s1126_s12 = scalar_lea.hbm %s1659_s1, 1024 }
  0x51   : > { %s1121_s10 = scalar_lea.hbm %s1442_s9, 512  ;;  %p1127_p13 = scmp.lt.u32.totalorder %s1442_s9, %s1659_s1 }
  0x52   : > { %p1122_p12 = scmp.ne.s32.totalorder %s1442_s9, %s1121_s10  ;;  %p1128_p6 = scmp.lt.u32.totalorder %s1126_s12, %s1121_s10 }
  0x53   : > { %p1130_p3 = scmp.lt.u32.totalorder %s1121_s10, %s1442_s9 }
  0x54   : > { %p1124_p1 = pnand %p1123_p0, %p1122_p12  ;;  %p1129_p10 = por %p1128_p6, %p1127_p13 }
  0x56   : > { %p1125_p2 = pneg %p1124_p1  ;;  %p1131_p7 = por %p1130_p3, %p1129_p10 }
  0x58   : > { %p1132_p9 = pnand %p1131_p7, %p1125_p2 }
  0x5a   : > { %1135 = shalt.err (!%p1132_p9)
}
  0x5b   : > { %s1136_s24 = scalar_lea.vmem %s1444_s11, 512  ;;  %s1265_s16 = smov [#allocation3]  }
  0x5c   : > { %p1137_p12 = scmp.ne.s32.totalorder %s1444_s11, %s1136_s24  ;;  %s1141_s17 = sshll.u32 %s1265_s16, 4  ;;  %s1142_s17 = int_to_ptr.vmem [resolvable:$false] %s1141_s17 }
  0x5d   : > { %s1143_s28 = scalar_lea.vmem %s1142_s17, 1024  ;;  %p1144_p4 = scmp.lt.s32.totalorder %s1444_s11, %s1142_s17 }
  0x5e   : > { %p1139_p1 = pnand %p1137_p12, %p1123_p0  ;;  %p1145_p13 = scmp.lt.s32.totalorder %s1143_s28, %s1136_s24 }
  0x60   : > { %p1140_p5 = pneg %p1139_p1  ;;  %p1146_p6 = por %p1145_p13, %p1144_p4 }
  0x62   : > { %p1147_p10 = pnand %p1146_p6, %p1140_p5 }
  0x64   : > { %1150 = shalt.err (!%p1147_p10)
}
  0x65   : > { %s1661_s15 = smov 8   ;;  %s1662_s10 = smov 128  }
  0x66   : > { %989 = dma.hbm_to_vmem [thread:$0]  (!%p1446_p11), %s1442_s9, 512, %s1444_s11, %s1457_s8, %s1662_s10, %s1662_s10, %s1661_s15  }
  0x67   : > { %s235_s12 = sand.u32 1, %s1259_s23   ;;  %s1151_s7 = scalar_lea.hbm %s1453_s14, 512 }
  0x68   : > { %s1492_s13 = scalar_lea.sflag [#allocation7], %s235_s12  ;;  %p1152_p4 = scmp.ne.s32.totalorder %s1453_s14, %s1151_s7 }
  0x69   : > { %s1156_s17 = scalar_lea.hbm %s1641_s2, 1024  ;;  %p1157_p3 = scmp.lt.u32.totalorder %s1453_s14, %s1641_s2 }
  0x6a   : > { %p1154_p5 = pnand %p1152_p4, %p1123_p0  ;;  %p1158_p7 = scmp.lt.u32.totalorder %s1156_s17, %s1151_s7 }
  0x6b   : > { %p1160_p12 = scmp.lt.u32.totalorder %s1151_s7, %s1453_s14 }
  0x6c   : > { %p1155_p2 = pneg %p1154_p5  ;;  %p1159_p9 = por %p1158_p7, %p1157_p3 }
  0x6e   : > { %p1161_p1 = por %p1160_p12, %p1159_p9 }
  0x70   : > { %p1162_p13 = pnand %p1161_p1, %p1155_p2 }
  0x72   : > { %1165 = shalt.err (!%p1162_p13)
}
  0x73   : > { %s1166_s9 = scalar_lea.vmem %s1489_s6, 512  ;;  %s1266_s11 = smov [#allocation6]  }
  0x74   : > { %p1167_p6 = scmp.ne.s32.totalorder %s1489_s6, %s1166_s9  ;;  %s1171_s8 = sshll.u32 %s1266_s11, 4  ;;  %s1172_s8 = int_to_ptr.vmem [resolvable:$false] %s1171_s8 }
  0x75   : > { %s1173_s1 = scalar_lea.vmem %s1172_s8, 1024  ;;  %p1174_p5 = scmp.lt.s32.totalorder %s1489_s6, %s1172_s8 }
  0x76   : > { %p1169_p10 = pnand %p1167_p6, %p1123_p0  ;;  %p1175_p3 = scmp.lt.s32.totalorder %s1173_s1, %s1166_s9 }
  0x78   : > { %p1170_p4 = pneg %p1169_p10  ;;  %p1176_p7 = por %p1175_p3, %p1174_p5 }
  0x7a   : > { %p1177_p9 = pnand %p1176_p7, %p1170_p4 }
  0x7c   : > { %1180 = shalt.err (!%p1177_p9)
}
  0x7d   : > { %992 = dma.hbm_to_vmem [thread:$0]  (!%p1446_p11), %s1453_s14, 512, %s1489_s6, %s1492_s13, %s1662_s10, %s1662_s10, %s1661_s15  }
  0x7e   : > { %258 = sbr.rel (%p1343_p8) target bundleno = 445 (0x1bd), region = 40  ;;  %s1524_s12 = sand.u32 (!%p1343_p8), 1, %s1251_s21  }
  0x7f   : > { %s1527_s7 = sshll.u32 (!%p1343_p8), %s1524_s12, 5  ;;  %s261_s29 = scalar_lea.sflag (!%p1343_p8), [#allocation4], %s1524_s12 }
  0x80   : > { %s1531_s24 = scalar_lea.vmem (!%p1343_p8), [#allocation3], %s1527_s7  ;;  %p1663_p0 = scmp.ne.s32.totalorder (!%p1343_p8), %s1653_s25, 0 }
  0x85   : > { %1226 = dma.done.wait (%p1663_p0), %s261_s29, 512  }
  0x86   : > { %1228 = vsyncadd (%p1663_p0), %s261_s29, 4294966784  ;;  %s269_s27 = sand.u32 1, %s1324_s0   ;;  %s1539_s6 = scalar_lea.vmem [#allocation6], %s1527_s7 }
  0x87   : > { %s270_s14 = scalar_lea.sflag [#allocation7], %s269_s27 }
  0x88   : > { %1230 = dma.done.wait (%p1663_p0), %s270_s14, 512  }
  0x89   : > { %1232 = vsyncadd (%p1663_p0), %s270_s14, 4294966784  ;;  %p1664_p8 = scmp.eq.s32.totalorder %s1324_s0, 0 }
  0x8b   : > { %1234 = dma.done.wait (%p1664_p8), [#allocation7], 2048   ;;  %p1665_p11 = pmov %p1664_p8 }
  0x8c   : > { %p1666_p2 = pmov %p1664_p8 }
  0x8d   : > { %1236 = vsyncadd (%p1665_p11), [#allocation7], 4294965248 }
  0x8e   : > { %1238 = dma.done.wait (%p1666_p2), [#allocation10], 2048   ;;  %p1667_p12 = pmov %p1666_p2 }
  0x8f   : > { %v347_v0 = vld [vmem:[#allocation8] sm:$0xff]  ;;  %v348_v1 = vld [vmem:[#allocation8 + $0x8] sm:$0xff]  ;;  %v349_v5 = vld [vmem:[#allocation8 + $0x10] sm:$0xff]  ;;  %vm327_vm0 = vcmask 1043456   ;;  %s1567_s25 = sld [smem:[#allocation2]]  ;;  %s312_s15 = scalar_lea.vmem [#allocation11], %s1527_s7 }
  0x90   : > { %1240 = vsyncadd (%p1667_p12), [#allocation10], 4294965248  ;;  %v363_v2 = vld [vmem:[#allocation9] sm:$0xff]  ;;  %v901_v3 = vpack.c.bf16 %v348_v1, %v347_v0  ;;  %v364_v4 = vld [vmem:[#allocation9 + $0x8] sm:$0xff]  ;;  %s784_s10 = sshll.u32 %s1324_s0, 9  ;;  %s645_s13 = sshll.u32 %s312_s15, 4  ;;  %s1595_s13 = int_to_ptr.vmem [resolvable:$true] %s645_s13 }
  0x91   : > { %v350_v6 = vld [vmem:[#allocation8 + $0x18] sm:$0xff]  ;;  %v933_v7 = vpack.c.bf16 %v364_v4, %v363_v2  ;;  %v365_v9 = vld [vmem:[#allocation9 + $0x10] sm:$0xff]  ;;  %v351_v11 = vld [vmem:[#allocation8 + $0x20] sm:$0xff]  ;;  %s1593_s28 = scalar_lea.hbm %s1644_s5, %s784_s10  ;;  %s632_s9 = scalar_lea.sflag [#allocation5], %s1524_s12 }
  0x92   : > { %v905_v8 = vpack.c.bf16 %v350_v6, %v349_v5  ;;  %v366_v10 = vld [vmem:[#allocation9 + $0x18] sm:$0xff]  ;;  %902 = vmatprep.subr.bf16.mxu0 %v901_v3  ;;  %v352_v13 = vld [vmem:[#allocation8 + $0x28] sm:$0xff]  ;;  %v367_v14 = vld [vmem:[#allocation9 + $0x20] sm:$0xff]  ;;  %s1181_s11 = scalar_lea.vmem %s1595_s13, 512  ;;  %p1668_p13 = scmp.ne.s32.totalorder %s1658_s18, 0 }
  0x93   : > { %v937_v12 = vpack.c.bf16 %v366_v10, %v365_v9  ;;  %v368_v15 = vld [vmem:[#allocation9 + $0x28] sm:$0xff]  ;;  %934 = vmatprep.subr.bf16.mxu1 %v933_v7  ;;  %904 = vmatpush3.bf16.msra.mxu0 %v901_v3  ;;  %v909_v16 = vpack.c.bf16 %v352_v13, %v351_v11  ;;  %v353_v18 = vld [vmem:[#allocation8 + $0x30] sm:$0xff]  ;;  %v354_v19 = vld [vmem:[#allocation8 + $0x38] sm:$0xff]  ;;  %p1182_p1 = scmp.ne.s32.totalorder %s1595_s13, %s1181_s11  ;;  %s1267_s0 = smov [#allocation11]  }
  0x94   : > { %936 = vmatpush3.bf16.msra.mxu1 %v933_v7  ;;  %906 = vmatprep.subr.bf16.mxu0 %v905_v8  ;;  %v941_v17 = vpack.c.bf16 %v368_v15, %v367_v14  ;;  %v369_v20 = vld [vmem:[#allocation9 + $0x30] sm:$0xff]  ;;  %v370_v21 = vld [vmem:[#allocation9 + $0x38] sm:$0xff]  ;;  %v913_v22 = vpack.c.bf16 %v354_v19, %v353_v18  ;;  %v355_v24 = vld [vmem:[#allocation8 + $0x40] sm:$0xff]  ;;  %s1185_s8 = sshll.u32 %s1267_s0, 4  ;;  %s1186_s8 = int_to_ptr.vmem [resolvable:$false] %s1185_s8 }
  0x95   : > { %938 = vmatprep.subr.bf16.mxu1 %v937_v12  ;;  %v945_v23 = vpack.c.bf16 %v370_v21, %v369_v20  ;;  %v356_v25 = vld [vmem:[#allocation8 + $0x48] sm:$0xff]  ;;  %v313_v26 = vld [vmem:[%s1539_s6] sm:$0xff]  ;;  %v316_v29 = vld [vmem:[%s1539_s6 + $0x18] sm:$0xff]  ;;  %p1183_p6 = pnand %p1182_p1, %p1668_p13  ;;  %s1187_s1 = scalar_lea.vmem %s1186_s8, 1024 }
  0x96   : > { %v371_v27 = vld [vmem:[#allocation9 + $0x40] sm:$0xff]  ;;  %v372_v28 = vld [vmem:[#allocation9 + $0x48] sm:$0xff]  ;;  %v317_v30 = vmul.f32 %v313_v26, %v313_v26  ;;  %v320_v31 = vmul.f32 %v316_v29, %v316_v29  ;;  %v917_v32 = vpack.c.bf16 %v356_v25, %v355_v24  ;;  %v357_v36 = vld [vmem:[#allocation8 + $0x50] sm:$0xff]  ;;  %p1188_p4 = scmp.lt.s32.totalorder %s1595_s13, %s1186_s8  ;;  %p1189_p5 = scmp.lt.s32.totalorder %s1187_s1, %s1181_s11 }
  0x97   : > { %908 = vmatpush3.bf16.msra.mxu0 %v905_v8  ;;  %v314_v34 = vld [vmem:[%s1539_s6 + $0x8] sm:$0xff]  ;;  %v949_v35 = vpack.c.bf16 %v372_v28, %v371_v27  ;;  %v358_v37 = vld [vmem:[#allocation8 + $0x58] sm:$0xff]  ;;  %v315_v39 = vld [vmem:[%s1539_s6 + $0x10] sm:$0xff]  ;;  %p1184_p10 = pneg %p1183_p6 }
  0x98   : > { %940 = vmatpush3.bf16.msra.mxu1 %v937_v12  ;;  %910 = vmatprep.subr.bf16.mxu0 %v909_v16  ;;  %v328_v33 = vrot.slane %v317_v30, 4  ;;  %v322_v38 = vrot.slane %v320_v31, 4  ;;  %v373_v40 = vld [vmem:[#allocation9 + $0x50] sm:$0xff]  ;;  %v374_v41 = vld [vmem:[#allocation9 + $0x58] sm:$0xff]  ;;  %v318_v43 = vmul.f32 %v314_v34, %v314_v34  ;;  %v921_v44 = vpack.c.bf16 %v358_v37, %v357_v36  ;;  %v359_v48 = vld [vmem:[#allocation8 + $0x60] sm:$0xff]  ;;  %p1190_p3 = por %p1189_p5, %p1188_p4 }
  0x99   : > { %942 = vmatprep.subr.bf16.mxu1 %v941_v17  ;;  %v319_v46 = vmul.f32 %v315_v39, %v315_v39  ;;  %v953_v47 = vpack.c.bf16 %v374_v41, %v373_v40  ;;  %v360_v49 = vld [vmem:[#allocation8 + $0x68] sm:$0xff]  ;;  %v375_v50 = vld [vmem:[#allocation9 + $0x60] sm:$0xff]  ;;  %v361_v57 = vld [vmem:[#allocation8 + $0x70] sm:$0xff] }
  0x9a   : > { %v338_v42 = vsel %vm327_vm0, %v322_v38, %v328_v33  ;;  %v376_v51 = vld [vmem:[#allocation9 + $0x68] sm:$0xff]  ;;  %v329_v53 = vrot.slane %v318_v43, 4  ;;  %v925_v54 = vpack.c.bf16 %v360_v49, %v359_v48  ;;  %v362_v58 = vld [vmem:[#allocation8 + $0x78] sm:$0xff]  ;;  %v377_v59 = vld [vmem:[#allocation9 + $0x70] sm:$0xff]  ;;  %p1191_p7 = pnand %p1190_p3, %p1184_p10 }
  0x9b   : > { %912 = vmatpush3.bf16.msra.mxu0 %v909_v16  ;;  %v339_v45 = vadd.f32 %v338_v42, %v317_v30  ;;  %v331_v55 = vrot.slane %v319_v46, 4  ;;  %v957_v56 = vpack.c.bf16 %v376_v51, %v375_v50  ;;  %v378_v60 = vld [vmem:[#allocation9 + $0x78] sm:$0xff]  ;;  %v929_v62 = vpack.c.bf16 %v362_v58, %v361_v57 }
  0x9c   : > { %944 = vmatpush3.bf16.msra.mxu1 %v941_v17  ;;  %914 = vmatprep.subr.bf16.mxu0 %v913_v22  ;;  %v330_v61 = vsel %vm327_vm0, %v328_v33, %v329_v53  ;;  %v961_v0 = vpack.c.bf16 %v378_v60, %v377_v59 }
  0x9d   : > { %946 = vmatprep.subr.bf16.mxu1 %v945_v23  ;;  %v343_v52 = vadd.f32 %v339_v45, %v320_v31  ;;  %v332_v63 = vsel %vm327_vm0, %v329_v53, %v331_v55  ;;  %v340_v1 = vadd.f32 %v330_v61, %v318_v43  ;;  %v333_v3 = vsel %vm327_vm0, %v331_v55, %v322_v38 }
  0x9e   : > { %v341_v2 = vadd.f32 %v332_v63, %v319_v46  ;;  %v342_v5 = vadd.f32 %v333_v3, %v320_v31  ;;  %v614_v61 = vstv %s1567_s25 }
  0x9f   : > { %916 = vmatpush3.bf16.msra.mxu0 %v913_v22  ;;  %857 = vmatprep.mubr.f32.mxu0 %v343_v52  ;;  %v344_v4 = vadd.f32 %v340_v1, %v317_v30 }
  0xa0   : > { %948 = vmatpush3.bf16.msra.mxu1 %v945_v23  ;;  %918 = vmatprep.subr.bf16.mxu0 %v917_v32  ;;  %v345_v6 = vadd.f32 %v341_v2, %v318_v43  ;;  %v346_v7 = vadd.f32 %v342_v5, %v319_v46 }
  0xa1   : > { %950 = vmatprep.subr.bf16.mxu1 %v949_v35  ;;  %895 = vmatprep.mubr.f32.mxu1 %v343_v52 }
  0xa3   : > { %920 = vmatpush3.bf16.msra.mxu0 %v917_v32 }
  0xa4   : > { %952 = vmatpush3.bf16.msra.mxu1 %v949_v35  ;;  %922 = vmatprep.subr.bf16.mxu0 %v921_v44 }
  0xa5   : > { %954 = vmatprep.subr.bf16.mxu1 %v953_v47 }
  0xa7   : > { %924 = vmatpush3.bf16.msra.mxu0 %v921_v44 }
  0xa8   : > { %956 = vmatpush3.bf16.msra.mxu1 %v953_v47  ;;  %926 = vmatprep.subr.bf16.mxu0 %v925_v54 }
  0xa9   : > { %958 = vmatprep.subr.bf16.mxu1 %v957_v56 }
  0xab   : > { %928 = vmatpush3.bf16.msra.mxu0 %v925_v54 }
  0xac   : > { %960 = vmatpush3.bf16.msra.mxu1 %v957_v56  ;;  %930 = vmatprep.subr.bf16.mxu0 %v929_v62 }
  0xad   : > { %962 = vmatprep.subr.bf16.mxu1 %v961_v0 }
  0xaf   : > { %932 = vmatpush3.bf16.msra.mxu0 %v929_v62 }
  0xb0   : > { %964 = vmatpush3.bf16.msra.mxu1 %v961_v0  ;;  %v610_v0 = vld [vmem:[%s1531_s24 + $0x8] sm:$0xff] }
  0xb1   : > { %v616_v5 = vadd.f32 %v614_v61, %v610_v0 }
  0xb2   : > { %858 = vmatmul.mubr.f32.vlgmr.msra.gmra.mrb[0].mxu0 %v344_v4 }
  0xb3   : > { %896 = vmatmul.mubr.f32.vlgmr.msra.gmra.mrb[0].mxu1 %v344_v4  ;;  %860 = vmatprep.mubr.f32.mxu0 %v345_v6 }
  0xb4   : > { %898 = vmatprep.mubr.f32.mxu1 %v345_v6 }
  0xb6   : > { %861 = vmatmul.mubr.f32.gmra.mrb[2].mxu0 %v346_v7 }
  0xb7   : > { %899 = vmatmul.mubr.f32.gmra.mrb[2].mxu1 %v346_v7  ;;  %v609_v7 = vld [vmem:[%s1531_s24] sm:$0xff] }
 0x185   : > { %v859_v8 = vpop.f32.mrb[0].mxu0 }
 0x186   : > { %v451_v9 = vadd.f32 1e-06, %v859_v8  ;;  %v897_v10 = vpop.f32.mrb[0].mxu1  ;;  %v445_v11 = vpop.f32.mrb[1].mxu0 }
 0x187   : > { %v564_v12 = vadd.f32 1e-06, %v897_v10  ;;  %v446_v13 = vadd.f32 1e-06, %v445_v11  ;;  %v558_v14 = vpop.f32.mrb[1].mxu1  ;;  %v615_v10 = vadd.f32 %v614_v61, %v609_v7 }
 0x188   : > { %1041 = vrsqrt.f32 %v451_v9  ;;  %v559_v18 = vadd.f32 1e-06, %v558_v14  ;;  %vm473_vm1 = vcmp.eq.f32.partialorder %v451_v9, inf  ;;  %vm475_vm2 = vcmp.eq.f32.partialorder %v451_v9, 0.0  ;;  %v611_v14 = vld [vmem:[%s1531_s24 + $0x10] sm:$0xff] }
 0x189   : > { %1043 = vrsqrt.f32 %v564_v12  ;;  %v862_v15 = vpop.f32.mrb[2].mxu0  ;;  %v476_v27 = vand.u32 2147483648, %v451_v9  ;;  %vm586_vm3 = vcmp.eq.f32.partialorder %v564_v12, inf  ;;  %vm588_vm4 = vcmp.eq.f32.partialorder %v564_v12, 0.0 }
 0x18a   : > { %1045 = vrsqrt.f32 %v446_v13  ;;  %v900_v16 = vpop.f32.mrb[2].mxu1  ;;  %v455_v17 = vpop.f32.mrb[3].mxu0  ;;  %v461_v19 = vadd.f32 1e-06, %v862_v15  ;;  %v589_v30 = vand.u32 2147483648, %v564_v12  ;;  %vm466_vm5 = vcmp.eq.f32.partialorder %v446_v13, inf }
 0x18b   : > { %v574_v20 = vadd.f32 1e-06, %v900_v16  ;;  %v1561_v21 = vadd.f32 1e-06, %v455_v17  ;;  %v568_v22 = vpop.f32.mrb[3].mxu1  ;;  %1047 = vrsqrt.f32 %v559_v18  ;;  %vm468_vm6 = vcmp.eq.f32.partialorder %v446_v13, 0.0 }
 0x18c   : > { %1049 = vrsqrt.f32 %v461_v19  ;;  %v1564_v23 = vadd.f32 1e-06, %v568_v22  ;;  %v469_v35 = vand.u32 2147483648, %v446_v13  ;;  %vm579_vm7 = vcmp.eq.f32.partialorder %v559_v18, inf }
 0x18d   : > { %1051 = vrsqrt.f32 %v574_v20  ;;  %vm581_vm8 = vcmp.eq.f32.partialorder %v559_v18, 0.0  ;;  %v582_v39 = vand.u32 2147483648, %v559_v18  ;;  %vm487_vm9 = vcmp.eq.f32.partialorder %v461_v19, inf }
 0x18e   : > { %1053 = vrsqrt.f32 %v1561_v21  ;;  %vm489_vm10 = vcmp.eq.f32.partialorder %v461_v19, 0.0  ;;  %v490_v46 = vand.u32 2147483648, %v461_v19  ;;  %vm600_vm11 = vcmp.eq.f32.partialorder %v574_v20, inf }
 0x18f   : > { %1055 = vrsqrt.f32 %v1564_v23  ;;  %vm602_vm12 = vcmp.eq.f32.partialorder %v574_v20, 0.0  ;;  %v603_v52 = vand.u32 2147483648, %v574_v20  ;;  %vm480_vm13 = vcmp.eq.f32.partialorder %v1561_v21, inf }
 0x190   : > { %v483_v60 = vand.u32 2147483648, %v1561_v21  ;;  %vm482_vm14 = vcmp.eq.f32.partialorder %v1561_v21, 0.0  ;;  %vm593_vm15 = vcmp.eq.f32.partialorder %v1564_v23, inf  ;;  %v596_v2 = vand.u32 2147483648, %v1564_v23 }
 0x191   : > { %vm595_vm0 = vcmp.eq.f32.partialorder %v1564_v23, 0.0  ;;  %v617_v17 = vadd.f32 %v614_v61, %v611_v14 }
 0x192   : > { %v1042_v24 = vpop.eup %1041 }
 0x193   : > { %v1044_v25 = vpop.eup %1043  ;;  %v472_v26 = vmul.f32 %v1042_v24, %v451_v9 }
 0x194   : > { %v1046_v28 = vpop.eup %1045  ;;  %v585_v29 = vmul.f32 %v1044_v25, %v564_v12 }
 0x195   : > { %v474_v31 = vsel %vm473_vm1, %v451_v9, %v472_v26  ;;  %v465_v32 = vmul.f32 %v1046_v28, %v446_v13  ;;  %v1048_v36 = vpop.eup %1047  ;;  %v612_v9 = vld [vmem:[%s1531_s24 + $0x18] sm:$0xff] }
 0x196   : > { %v477_v33 = vsel %vm475_vm2, %v476_v27, %v474_v31  ;;  %v587_v34 = vsel %vm586_vm3, %v564_v12, %v585_v29  ;;  %v1050_v40 = vpop.eup %1049  ;;  %v578_v42 = vmul.f32 %v1048_v36, %v559_v18  ;;  %v618_v12 = vadd.f32 %v614_v61, %v612_v9 }
 0x197   : > { %v590_v37 = vsel %vm588_vm4, %v589_v30, %v587_v34  ;;  %v467_v38 = vsel %vm466_vm5, %v446_v13, %v465_v32  ;;  %v1052_v43 = vpop.eup %1051  ;;  %v486_v45 = vmul.f32 %v1050_v40, %v461_v19 }
 0x198   : > { %v606_v41 = vadd.f32 %v590_v37, %v477_v33  ;;  %v470_v44 = vsel %vm468_vm6, %v469_v35, %v467_v38  ;;  %v1054_v47 = vpop.eup %1053  ;;  %v580_v48 = vsel %vm579_vm7, %v559_v18, %v578_v42  ;;  %v599_v49 = vmul.f32 %v1052_v43, %v574_v20 }
 0x199   : > { %v583_v50 = vsel %vm581_vm8, %v582_v39, %v580_v48  ;;  %v488_v51 = vsel %vm487_vm9, %v461_v19, %v486_v45  ;;  %v479_v53 = vmul.f32 %v1054_v47, %v1561_v21  ;;  %v1056_v57 = vpop.eup %1055 }
 0x19a   : > { %1057 = vrcp.f32 %v606_v41  ;;  %v605_v54 = vadd.f32 %v583_v50, %v470_v44  ;;  %v491_v55 = vsel %vm489_vm10, %v490_v46, %v488_v51  ;;  %v601_v56 = vsel %vm600_vm11, %v574_v20, %v599_v49 }
 0x19b   : > { %v604_v58 = vsel %vm602_vm12, %v603_v52, %v601_v56  ;;  %v481_v59 = vsel %vm480_vm13, %v1561_v21, %v479_v53  ;;  %v592_v63 = vmul.f32 %v1056_v57, %v1564_v23 }
 0x19c   : > { %1059 = vrcp.f32 %v605_v54  ;;  %v608_v62 = vadd.f32 %v604_v58, %v491_v55  ;;  %v484_v1 = vsel %vm482_vm14, %v483_v60, %v481_v59 }
 0x19d   : > { %v594_v3 = vsel %vm593_vm15, %v1564_v23, %v592_v63 }
 0x19e   : > { %1061 = vrcp.f32 %v608_v62  ;;  %v597_v4 = vsel %vm595_vm0, %v596_v2, %v594_v3 }
 0x19f   : > { %v607_v6 = vadd.f32 %v597_v4, %v484_v1 }
 0x1a1   : > { %1063 = vrcp.f32 %v607_v6 }
 0x1a4   : > { %v1058_v8 = vpop.eup %1057 }
 0x1a5   : > { %v624_v11 = vmul.f32 %v1058_v8, %v616_v5 }
 0x1a6   : > { %v1060_v13 = vpop.eup %1059 }
 0x1a7   : > { %628 = vst [vmem:[%s312_s15 + $0x8] sm:$0xff] %v624_v11  ;;  %v623_v15 = vmul.f32 %v1060_v13, %v615_v10 }
 0x1a8   : > { %v1062_v16 = vpop.eup %1061 }
 0x1a9   : > { %v626_v18 = vmul.f32 %v1062_v16, %v618_v12  ;;  %627 = vst [vmem:[%s312_s15] sm:$0xff] %v623_v15 }
 0x1ab   : > { %630 = vst [vmem:[%s312_s15 + $0x18] sm:$0xff] %v626_v18  ;;  %v1064_v19 = vpop.eup %1063 }
 0x1ac   : > { %v625_v20 = vmul.f32 %v1064_v19, %v617_v17 }
 0x1ae   : > { %629 = vst [vmem:[%s312_s15 + $0x10] sm:$0xff] %v625_v20 }
 0x1af   : > { %1194 = shalt.err (!%p1191_p7)
}
 0x1b0   : > { %s1195_s7 = scalar_lea.hbm %s1593_s28, 512  ;;  %s1199_s27 = scalar_lea.hbm %s1644_s5, 1024 }
 0x1b1   : > { %p1196_p9 = scmp.ne.s32.totalorder %s1593_s28, %s1195_s7  ;;  %p1200_p11 = scmp.lt.u32.totalorder %s1593_s28, %s1644_s5 }
 0x1b2   : > { %p1201_p2 = scmp.lt.u32.totalorder %s1199_s27, %s1195_s7  ;;  %p1203_p1 = scmp.lt.u32.totalorder %s1195_s7, %s1593_s28 }
 0x1b3   : > { %p1197_p0 = pnand %p1196_p9, %p1668_p13 }
 0x1b4   : > { %p1202_p12 = por %p1201_p2, %p1200_p11 }
 0x1b5   : > { %p1198_p8 = pneg %p1197_p0 }
 0x1b6   : > { %p1204_p6 = por %p1203_p1, %p1202_p12 }
 0x1b8   : > { %p1205_p10 = pnand %p1204_p6, %p1198_p8 }
 0x1ba   : > { %1208 = shalt.err (!%p1205_p10)
}
 0x1bb   : > { %s1268_s25 = smov 128   ;;  %s1269_s15 = smov 8  }
 0x1bc   : > { %977 = dma.vmem_to_hbm [thread:$0]  (%p1668_p13), %s1595_s13, 512, %s1593_s28, %s632_s9, %s1268_s25, %s1268_s25, %s1269_s15  }
 0x1bd PF: > { %s660_s10 = sand.u32 1, %s1247_s20   ;;  %p1669_p4 = scmp.ne.s32.totalorder %s1654_s26, 0 }
 0x1be   : > { %p1670_p5 = scmp.ge.s32.totalorder %s1259_s23, 2  ;;  %s661_s16 = scalar_lea.sflag [#allocation5], %s660_s10 }
 0x1c0   : > { %p994_p3 = pnand %p1670_p5, %p1669_p4 }
 0x1c2   : > { %1242 = dma.done.wait (!%p994_p3), %s661_s16, 512  }
 0x1c3   : > { %1244 = vsyncadd (!%p994_p3), %s661_s16, 4294966784  ;;  %p23_p7 = scmp.ge.s32.totalorder %s1419_s30, 4   ;;  %s1671_s20 = smov %s1251_s21 }
 0x1c4   : > { %s1672_s21 = smov %s1255_s22  ;;  %s1673_s22 = smov %s1435_s19 }
 0x1c5   : > { %s1674_s23 = smov %s1419_s30  ;;  %25 = sbr.rel (!%p23_p7) target bundleno = 11 (0xb), region = 106 }
 0x1cc   :  { %666 = vsyncpa [#allocation4], 1 }
 0x1cd   :  { %668 = vsyncpa [#allocation4 + $0x1], 1 }
 0x1ce   :  { %669 = vsyncpa [#allocation7], 1 }
 0x1cf   :  { %671 = vsyncpa [#allocation7 + $0x1], 1 }
 0x1d0   :  { %672 = vsyncpa [#allocation10], 1 }
 0x1d1   :  { %673 = vsyncpa [#allocation5], 1 }
 0x1d2   :  { %675 = vsyncpa [#allocation5 + $0x1], 1 }

</bundles_post_ra>
